<compile_context>
chip_gen: v7x
topology: tpu7x:2x2x1
jax: 0.10.0
libtpu: 0.0.40
codegen_flags: <defaults>
</compile_context>

<pallas_src>
import functools

import jax
import jax.numpy as jnp
from jax.experimental import pallas as pl
from jax.experimental.pallas import tpu as pltpu

_LANE = 128
_SUBLANE = 8


def _round_up(x, m):
    return (x + m - 1) // m * m


def _vmem_budget_bytes():
    """~75% of this chip's physical VMEM (fallback: conservative 48 MiB)."""
    try:
        cap = int(pltpu.get_tpu_info().vmem_capacity_bytes)
    except Exception:
        cap = 64 * 1024 * 1024
    return cap * 3 // 4


# --------------------------------- kernels ---------------------------------

def _linear_kernel_single(x_ref, w_ref, b_ref, o_ref, *, mxu_dtype):
    """Whole problem resident in VMEM: one MXU pass, bias fused, direct store.

    MXU operands are cast to `mxu_dtype` (bf16 -> 2x MXU throughput on
    v6e/v7x); accumulation and the bias add stay in f32.
    """
    acc = jnp.dot(
        x_ref[...].astype(mxu_dtype),
        w_ref[...].astype(mxu_dtype),
        preferred_element_type=jnp.float32,
    )
    o_ref[...] = (acc + b_ref[...].astype(jnp.float32)).astype(o_ref.dtype)


def _linear_kernel_tiled(x_ref, w_ref, b_ref, o_ref, acc_ref, *, mxu_dtype):
    """Fallback for large problems: grid = (B tiles, N tiles, K tiles).

    x_ref: (tm, tk), w_ref: (tk, tn), b_ref: (1, tn), o_ref/acc_ref: (tm, tn).
    K is the trailing ("arbitrary") reduction axis; B/N axes are "parallel".
    """
    k = pl.program_id(2)

    @pl.when(k == 0)
    def _():
        # Fold the bias into the accumulator init (no epilogue add).
        acc_ref[...] = jnp.broadcast_to(
            b_ref[...].astype(jnp.float32), acc_ref.shape
        )

    acc_ref[...] += jnp.dot(
        x_ref[...].astype(mxu_dtype),
        w_ref[...].astype(mxu_dtype),
        preferred_element_type=jnp.float32,
    )

    @pl.when(k == pl.num_programs(2) - 1)
    def _():
        o_ref[...] = acc_ref[...].astype(o_ref.dtype)


# --------------------------------- wrapper ---------------------------------

@functools.partial(
    jax.jit, static_argnames=("single_block", "tk_max", "mxu_dtype")
)
def logistic_forward(x, w, b, *, single_block=None, tk_max=None,
                     mxu_dtype=jnp.bfloat16):
    """Logistic head: out = flatten(x) @ w + b.

    x: (B, *volume) or (B, K);  w: (K, N);  b: (N,)  ->  (B, N)
    """
    B = x.shape[0]
    x2 = x.reshape(B, -1)
    K = x2.shape[1]
    Kw, N = w.shape
    assert K == Kw, f"in_features mismatch: {K} vs {Kw}"

    xb = jnp.dtype(x2.dtype).itemsize
    wb = jnp.dtype(w.dtype).itemsize
    bbytes = jnp.dtype(b.dtype).itemsize
    ob = xb  # output dtype == x dtype

    budget = _vmem_budget_bytes()
    bias2 = b.reshape(1, N)

    if single_block is None:
        resident = B * K * xb + K * N * wb + N * bbytes + B * N * ob
        single_block = 2 * resident + (2 << 20) <= budget

    # ------------------------- resident single pass -------------------------
    if single_block:
        out = pl.pallas_call(
            functools.partial(_linear_kernel_single, mxu_dtype=mxu_dtype),
            out_shape=jax.ShapeDtypeStruct((B, N), x.dtype),
            compiler_params=pltpu.CompilerParams(vmem_limit_bytes=budget),
            cost_estimate=pl.CostEstimate(
                flops=2 * B * K * N,
                transcendentals=0,
                bytes_accessed=B * K * xb + K * N * wb + N * bbytes + B * N * ob,
            ),
        )(x2, w, bias2)
        return out

    # ---------------------- tiled fallback (large K/B/N) --------------------
    n_pad = _round_up(max(N, _LANE), _LANE)
    tn = 256 if (n_pad >= 256 and n_pad % 256 == 0) else _LANE

    b_rows = _round_up(max(B, _SUBLANE), _SUBLANE)
    if b_rows <= 512:
        tm = b_rows
    else:
        tm = 256
        b_rows = _round_up(b_rows, tm)

    # Adaptive reduction tile: as large as VMEM allows (amortizes the
    # ~0.35 us per-grid-step overhead) while minimizing K zero-padding.
    if tk_max is None:
        tk_max = 16384 if max(xb, wb) <= 2 else 8192
    n_steps = pl.cdiv(K, tk_max)
    tk = _round_up(pl.cdiv(K, n_steps), 512)

    def _step_bytes(tk_):
        return (2 * (tm * tk_ * xb + tk_ * tn * wb)   # double-buffered inputs
                + 2 * tm * tn * ob                    # double-buffered output
                + tm * tn * 4                         # f32 accumulator
                + 2 * tn * bbytes)                    # bias

    while tk > 512 and _step_bytes(tk) > budget:
        tk = _round_up(tk // 2, 512)
    k_pad = _round_up(K, tk)

    # One fused pad per operand; skip entirely when already aligned.
    x_p = x2 if (b_rows == B and k_pad == K) else jnp.pad(
        x2, ((0, b_rows - B), (0, k_pad - K)))
    # TODO(synk): for hot-loop use with N % 128 != 0, pre-pad the weight once
    # at parameter-init time (outside jit) to avoid this per-call HBM pass.
    w_p = w if (k_pad == K and n_pad == N) else jnp.pad(
        w, ((0, k_pad - K), (0, n_pad - N)))
    bias_p = bias2 if n_pad == N else jnp.pad(bias2, ((0, 0), (0, n_pad - N)))

    nb, nn, nk = b_rows // tm, n_pad // tn, k_pad // tk

    out = pl.pallas_call(
        functools.partial(_linear_kernel_tiled, mxu_dtype=mxu_dtype),
        out_shape=jax.ShapeDtypeStruct((b_rows, n_pad), x.dtype),
        grid_spec=pltpu.PrefetchScalarGridSpec(
            num_scalar_prefetch=0,
            grid=(nb, nn, nk),
            in_specs=[
                pl.BlockSpec((tm, tk), lambda i, j, k: (i, k)),  # x tile
                pl.BlockSpec((tk, tn), lambda i, j, k: (k, j)),  # w tile
                pl.BlockSpec((1, tn), lambda i, j, k: (0, j)),   # bias tile
            ],
            out_specs=pl.BlockSpec((tm, tn), lambda i, j, k: (i, j)),
            scratch_shapes=[pltpu.VMEM((tm, tn), jnp.float32)],
        ),
        compiler_params=pltpu.CompilerParams(
            dimension_semantics=("parallel", "parallel", "arbitrary"),
            vmem_limit_bytes=budget,
        ),
        cost_estimate=pl.CostEstimate(
            flops=2 * b_rows * k_pad * n_pad,
            transcendentals=0,
            bytes_accessed=(b_rows * k_pad * xb * nn
                            + k_pad * n_pad * wb * nb
                            + n_pad * bbytes
                            + b_rows * n_pad * ob),
        ),
    )(x_p, w_p, bias_p)
    return out[:B, :N]


if __name__ == "__main__":
    # Module config: volume = (4, 16, 16) -> in_features = 1024, num_classes = 10
    volume = (4, 16, 16)
    in_features = 4 * 16 * 16
    num_classes = 10
    batch = 8

    key = jax.random.PRNGKey(0)
    kx, kw, kb = jax.random.split(key, 3)

    # Parameters (torch.nn.Linear's U(-1/sqrt(fan_in), +) scheme). The weight
    # is cast to bf16 ONCE at init time — halves weight HBM traffic and feeds
    # the MXU directly; the bias stays f32 (added in f32 in-kernel).
    bound = 1.0 / (in_features ** 0.5)
    w = jax.random.uniform(
        kw, (in_features, num_classes), jnp.float32, -bound, bound
    ).astype(jnp.bfloat16)
    b = jax.random.uniform(kb, (num_classes,), jnp.float32, -bound, bound)

    # Input in its natural (B, *volume) layout; the wrapper flattens it.
    x = jax.random.normal(kx, (batch,) + volume, jnp.float32)

    out = jax.block_until_ready(logistic_forward(x, w, b))

    # Reference with identical operand rounding (bf16 operands, f32 accumulate).
    x_flat = x.reshape(batch, -1).astype(jnp.bfloat16).astype(jnp.float32)
    ref = x_flat @ w.astype(jnp.float32) + b
    assert out.shape == (batch, num_classes)
    assert out.dtype == x.dtype
    assert jnp.allclose(out, ref, atol=1e-4, rtol=1e-4), float(
        jnp.abs(out - ref).max()
    )

    # Also exercise the tiled fallback (odd K, forced multi-step reduction).
    K2, B2 = 3000, 4
    bound2 = 1.0 / (K2 ** 0.5)
    x2 = jax.random.normal(kx, (B2, K2), jnp.float32)
    w2 = jax.random.uniform(kw, (K2, num_classes), jnp.float32, -bound2, bound2)
    b2 = jax.random.uniform(kb, (num_classes,), jnp.float32, -bound2, bound2)
    out2 = jax.block_until_ready(
        logistic_forward(x2, w2, b2, single_block=False, tk_max=1024)
    )
    ref2 = (x2.astype(jnp.bfloat16).astype(jnp.float32)
            @ w2.astype(jnp.bfloat16).astype(jnp.float32) + b2)
    assert out2.shape == (B2, num_classes)
    assert jnp.allclose(out2, ref2, atol=1e-4, rtol=1e-4), float(
        jnp.abs(out2 - ref2).max()
    )

    print("KERNEL_OK")
</pallas_src>

<mosaic_0001>
module attributes {stable_mosaic.version = 11 : i64} {
  func.func @_linear_kernel_single(%arg0: memref<8x1024xf32, #tpu.memory_space<vmem>>, %arg1: memref<1024x10xbf16, #tpu.memory_space<vmem>>, %arg2: memref<1x10xf32, #tpu.memory_space<vmem>>, %arg3: memref<8x10xf32, #tpu.memory_space<vmem>>) attributes {dimension_semantics = [], scalar_prefetch = 0 : i64, scratch_operands = 0 : i64, tpu.core_type = #tpu.core_type<tc>} {
    %c0 = arith.constant 0 : index
    %c0_0 = arith.constant 0 : index
    %0 = vector.load %arg0[%c0, %c0_0] : memref<8x1024xf32, #tpu.memory_space<vmem>>, vector<8x1024xf32>
    %1 = arith.truncf %0 : vector<8x1024xf32> to vector<8x1024xbf16>
    %c0_1 = arith.constant 0 : index
    %c0_2 = arith.constant 0 : index
    %2 = vector.load %arg1[%c0_1, %c0_2] : memref<1024x10xbf16, #tpu.memory_space<vmem>>, vector<1024x10xbf16>
    %cst = arith.constant dense<0.000000e+00> : vector<8x10xf32>
    %3 = tpu.matmul %1, %2, %cst {dimension_numbers = #tpu.dot_dimension_numbers<[1], [0], [0], [1], [0, 0, 1, 1], [], []>} : vector<8x1024xbf16>, vector<1024x10xbf16>, vector<8x10xf32> -> vector<8x10xf32>
    %c0_3 = arith.constant 0 : index
    %c0_4 = arith.constant 0 : index
    %4 = vector.load %arg2[%c0_3, %c0_4] : memref<1x10xf32, #tpu.memory_space<vmem>>, vector<1x10xf32>
    %5 = vector.broadcast %4 : vector<1x10xf32> to vector<8x10xf32>
    %6 = arith.addf %3, %5 : vector<8x10xf32>
    %c0_5 = arith.constant 0 : index
    %c0_6 = arith.constant 0 : index
    %7 = vector.load %arg3[%c0_5, %c0_6] : memref<8x10xf32, #tpu.memory_space<vmem>>, vector<8x10xf32>
    tpu.vector_store %arg3[%c0_5, %c0_6], %6 {strides = array<i32>} : memref<8x10xf32, #tpu.memory_space<vmem>>, vector<8x10xf32>,
    return
  }
}

</mosaic_0001>

<bundles_post_ra>
// kernel: logistic_forward.1
= control target key start
LH: loop header
LB: loop body
LE: loop exit
PB: predicated region body
PF: predicated region fallthrough
CT: control target
= control target key end

     0   :  { %s1221_s0 = inlined_call_operand.vmem [shape: f32[8,1024], index: 0, kind: input, shape index: {}]   ;;  %s1222_s1 = inlined_call_operand.vmem [shape: bf16[1024,10], index: 1, kind: input, shape index: {}]   ;;  %s1223_s2 = inlined_call_operand.vmem [shape: f32[1,10], index: 2, kind: input, shape index: {}]   ;;  %s1224_s3 = inlined_call_operand.hbm [shape: f32[8,10], index: 3, kind: output, shape index: {}]  }
   0x1   :  { %v881_v0 = vld [vmem:[%s1222_s1 + $0x40] sm:$0xff]   ;;  %v885_v4 = vld [vmem:[%s1222_s1 + $0x48] sm:$0xff]   ;;  %v889_v8 = vld [vmem:[%s1222_s1 + $0x50] sm:$0xff]  }
   0x2   :  { %v882_v1 = vld [vmem:[%s1222_s1 + $0xc0] sm:$0xff]   ;;  %792 = vmatprep.subr.bf16.mxu0 %v881_v0  ;;  %v886_v5 = vld [vmem:[%s1222_s1 + $0xc8] sm:$0xff]   ;;  %v890_v9 = vld [vmem:[%s1222_s1 + $0xd0] sm:$0xff]  }
   0x3   :  { %v883_v2 = vld [vmem:[%s1222_s1] sm:$0xff]   ;;  %814 = vmatprep.subr.bf16.mxu1 %v882_v1  ;;  %v887_v6 = vld [vmem:[%s1222_s1 + $0x8] sm:$0xff]   ;;  %v891_v10 = vld [vmem:[%s1222_s1 + $0x10] sm:$0xff]  }
   0x4   :  { %v884_v3 = vld [vmem:[%s1222_s1 + $0x80] sm:$0xff]   ;;  %793 = vmatpush3.bf16.msra.mxu0 %v883_v2  ;;  %v888_v7 = vld [vmem:[%s1222_s1 + $0x88] sm:$0xff]   ;;  %v892_v11 = vld [vmem:[%s1222_s1 + $0x90] sm:$0xff]  }
   0x5   :  { %815 = vmatpush3.bf16.msra.mxu1 %v884_v3  ;;  %794 = vmatprep.subr.bf16.mxu0 %v885_v4  ;;  %v893_v12 = vld [vmem:[%s1222_s1 + $0x58] sm:$0xff]   ;;  %v897_v16 = vld [vmem:[%s1222_s1 + $0x60] sm:$0xff]   ;;  %v901_v20 = vld [vmem:[%s1222_s1 + $0x68] sm:$0xff]  }
   0x6   :  { %816 = vmatprep.subr.bf16.mxu1 %v886_v5  ;;  %v894_v13 = vld [vmem:[%s1222_s1 + $0xd8] sm:$0xff]   ;;  %v898_v17 = vld [vmem:[%s1222_s1 + $0xe0] sm:$0xff]   ;;  %v902_v21 = vld [vmem:[%s1222_s1 + $0xe8] sm:$0xff]  }
   0x7   :  { %v895_v14 = vld [vmem:[%s1222_s1 + $0x18] sm:$0xff]   ;;  %v899_v18 = vld [vmem:[%s1222_s1 + $0x20] sm:$0xff]   ;;  %v903_v22 = vld [vmem:[%s1222_s1 + $0x28] sm:$0xff]  }
   0x8   :  { %795 = vmatpush3.bf16.msra.mxu0 %v887_v6  ;;  %v896_v15 = vld [vmem:[%s1222_s1 + $0x98] sm:$0xff]   ;;  %v900_v19 = vld [vmem:[%s1222_s1 + $0xa0] sm:$0xff]   ;;  %v904_v23 = vld [vmem:[%s1222_s1 + $0xa8] sm:$0xff]  }
   0x9   :  { %817 = vmatpush3.bf16.msra.mxu1 %v888_v7  ;;  %796 = vmatprep.subr.bf16.mxu0 %v889_v8  ;;  %v905_v24 = vld [vmem:[%s1222_s1 + $0x70] sm:$0xff]   ;;  %v909_v28 = vld [vmem:[%s1222_s1 + $0x78] sm:$0xff]   ;;  %v17_v32 = vld [vmem:[%s1221_s0 + $0x8] sm:$0xff] }
   0xa   :  { %818 = vmatprep.subr.bf16.mxu1 %v890_v9  ;;  %v906_v25 = vld [vmem:[%s1222_s1 + $0xf0] sm:$0xff]   ;;  %v910_v29 = vld [vmem:[%s1222_s1 + $0xf8] sm:$0xff]   ;;  %v16_v34 = vld [vmem:[%s1221_s0] sm:$0xff]  ;;  %v25_v35 = vpack.c.bf16 %v17_v32, %v17_v32 }
   0xb   :  { %v907_v26 = vld [vmem:[%s1222_s1 + $0x30] sm:$0xff]   ;;  %v911_v30 = vld [vmem:[%s1222_s1 + $0x38] sm:$0xff]   ;;  %v24_v37 = vpack.c.bf16 %v16_v34, %v16_v34  ;;  %v913_v40 = vld [vmem:[%s1222_s1 + $0x140] sm:$0xff]  }
   0xc   :  { %797 = vmatpush3.bf16.msra.mxu0 %v891_v10  ;;  %v908_v27 = vld [vmem:[%s1222_s1 + $0xb0] sm:$0xff]   ;;  %v912_v31 = vld [vmem:[%s1222_s1 + $0xb8] sm:$0xff]   ;;  %583 = vmatprep.mubr.bf16.mxu0 %v25_v35  ;;  %v914_v41 = vld [vmem:[%s1222_s1 + $0x1c0] sm:$0xff]  }
   0xd   :  { %819 = vmatpush3.bf16.msra.mxu1 %v892_v11  ;;  %798 = vmatprep.subr.bf16.mxu0 %v893_v12  ;;  %v19_v33 = vld [vmem:[%s1221_s0 + $0x18] sm:$0xff]  ;;  %v18_v38 = vld [vmem:[%s1221_s0 + $0x10] sm:$0xff]  ;;  %v915_v42 = vld [vmem:[%s1222_s1 + $0x100] sm:$0xff]  }
   0xe   :  { %820 = vmatprep.subr.bf16.mxu1 %v894_v13  ;;  %v27_v36 = vpack.c.bf16 %v19_v33, %v19_v33  ;;  %v26_v39 = vpack.c.bf16 %v18_v38, %v18_v38  ;;  %v916_v43 = vld [vmem:[%s1222_s1 + $0x180] sm:$0xff]   ;;  %v917_v44 = vld [vmem:[%s1222_s1 + $0x148] sm:$0xff]   ;;  %v921_v48 = vld [vmem:[%s1222_s1 + $0x150] sm:$0xff]  }
   0xf   :  { %v918_v45 = vld [vmem:[%s1222_s1 + $0x1c8] sm:$0xff]   ;;  %v922_v49 = vld [vmem:[%s1222_s1 + $0x1d0] sm:$0xff]   ;;  %v925_v52 = vld [vmem:[%s1222_s1 + $0x158] sm:$0xff]  }
  0x10   :  { %799 = vmatpush3.bf16.msra.mxu0 %v895_v14  ;;  %623 = vmatprep.mubr.bf16.mxu1 %v27_v36  ;;  %v919_v46 = vld [vmem:[%s1222_s1 + $0x108] sm:$0xff]   ;;  %v923_v50 = vld [vmem:[%s1222_s1 + $0x110] sm:$0xff]   ;;  %v926_v53 = vld [vmem:[%s1222_s1 + $0x1d8] sm:$0xff]  }
  0x11   :  { %821 = vmatpush3.bf16.msra.mxu1 %v896_v15  ;;  %800 = vmatprep.subr.bf16.mxu0 %v897_v16  ;;  %v920_v47 = vld [vmem:[%s1222_s1 + $0x188] sm:$0xff]   ;;  %v924_v51 = vld [vmem:[%s1222_s1 + $0x190] sm:$0xff]   ;;  %v927_v54 = vld [vmem:[%s1222_s1 + $0x118] sm:$0xff]  }
  0x12   :  { %822 = vmatprep.subr.bf16.mxu1 %v898_v17  ;;  %v928_v55 = vld [vmem:[%s1222_s1 + $0x198] sm:$0xff]   ;;  %v929_v56 = vld [vmem:[%s1222_s1 + $0x160] sm:$0xff]   ;;  %v933_v60 = vld [vmem:[%s1222_s1 + $0x168] sm:$0xff]  }
  0x13   :  { %v930_v57 = vld [vmem:[%s1222_s1 + $0x1e0] sm:$0xff]   ;;  %v934_v61 = vld [vmem:[%s1222_s1 + $0x1e8] sm:$0xff]   ;;  %v937_v0 = vld [vmem:[%s1222_s1 + $0x170] sm:$0xff]  }
  0x14   :  { %801 = vmatpush3.bf16.msra.mxu0 %v899_v18  ;;  %v931_v58 = vld [vmem:[%s1222_s1 + $0x120] sm:$0xff]   ;;  %v935_v62 = vld [vmem:[%s1222_s1 + $0x128] sm:$0xff]   ;;  %v938_v1 = vld [vmem:[%s1222_s1 + $0x1f0] sm:$0xff]  }
  0x15   :  { %823 = vmatpush3.bf16.msra.mxu1 %v900_v19  ;;  %802 = vmatprep.subr.bf16.mxu0 %v901_v20  ;;  %v932_v59 = vld [vmem:[%s1222_s1 + $0x1a0] sm:$0xff]   ;;  %v936_v63 = vld [vmem:[%s1222_s1 + $0x1a8] sm:$0xff]   ;;  %v939_v2 = vld [vmem:[%s1222_s1 + $0x130] sm:$0xff]  }
  0x16   :  { %824 = vmatprep.subr.bf16.mxu1 %v902_v21  ;;  %v940_v3 = vld [vmem:[%s1222_s1 + $0x1b0] sm:$0xff]   ;;  %v941_v4 = vld [vmem:[%s1222_s1 + $0x178] sm:$0xff]   ;;  %v21_v8 = vld [vmem:[%s1221_s0 + $0x28] sm:$0xff] }
  0x17   :  { %v942_v5 = vld [vmem:[%s1222_s1 + $0x1f8] sm:$0xff]   ;;  %v29_v10 = vpack.c.bf16 %v21_v8, %v21_v8  ;;  %v20_v12 = vld [vmem:[%s1221_s0 + $0x20] sm:$0xff]  ;;  %v22_v13 = vld [vmem:[%s1221_s0 + $0x30] sm:$0xff] }
  0x18   :  { %803 = vmatpush3.bf16.msra.mxu0 %v903_v22  ;;  %v943_v6 = vld [vmem:[%s1222_s1 + $0x138] sm:$0xff]  }
  0x19   :  { %825 = vmatpush3.bf16.msra.mxu1 %v904_v23  ;;  %804 = vmatprep.subr.bf16.mxu0 %v905_v24  ;;  %v944_v7 = vld [vmem:[%s1222_s1 + $0x1b8] sm:$0xff]  }
  0x1a   :  { %826 = vmatprep.subr.bf16.mxu1 %v906_v25  ;;  %v23_v9 = vld [vmem:[%s1221_s0 + $0x38] sm:$0xff] }
  0x1b   :  { %v31_v11 = vpack.c.bf16 %v23_v9, %v23_v9 }
  0x1c   :  { %805 = vmatpush3.bf16.msra.mxu0 %v907_v26 }
  0x1d   :  { %827 = vmatpush3.bf16.msra.mxu1 %v908_v27  ;;  %806 = vmatprep.subr.bf16.mxu0 %v909_v28 }
  0x1e   :  { %828 = vmatprep.subr.bf16.mxu1 %v910_v29 }
  0x20   :  { %807 = vmatpush3.bf16.msra.mxu0 %v911_v30 }
  0x21   :  { %829 = vmatpush3.bf16.msra.mxu1 %v912_v31  ;;  %836 = vmatprep.subr.bf16.mxu0 %v913_v40 }
  0x22   :  { %858 = vmatprep.subr.bf16.mxu1 %v914_v41 }
  0x23   :  { %584 = vmatmul.mubr.bf16.vlgmr.msra.gmra.mrb[0].mxu0 %v24_v37 }
  0x24   :  { %624 = vmatmul.mubr.bf16.vlgmr.msra.gmra.mrb[0].mxu1 %v26_v39  ;;  %837 = vmatpush3.bf16.msra.mxu0 %v915_v42 }
  0x25   :  { %859 = vmatpush3.bf16.msra.mxu1 %v916_v43  ;;  %838 = vmatprep.subr.bf16.mxu0 %v917_v44 }
  0x26   :  { %860 = vmatprep.subr.bf16.mxu1 %v918_v45 }
  0x28   :  { %839 = vmatpush3.bf16.msra.mxu0 %v919_v46 }
  0x29   :  { %861 = vmatpush3.bf16.msra.mxu1 %v920_v47  ;;  %840 = vmatprep.subr.bf16.mxu0 %v921_v48 }
  0x2a   :  { %862 = vmatprep.subr.bf16.mxu1 %v922_v49 }
  0x2c   :  { %841 = vmatpush3.bf16.msra.mxu0 %v923_v50 }
  0x2d   :  { %863 = vmatpush3.bf16.msra.mxu1 %v924_v51  ;;  %842 = vmatprep.subr.bf16.mxu0 %v925_v52 }
  0x2e   :  { %864 = vmatprep.subr.bf16.mxu1 %v926_v53 }
  0x30   :  { %843 = vmatpush3.bf16.msra.mxu0 %v927_v54 }
  0x31   :  { %865 = vmatpush3.bf16.msra.mxu1 %v928_v55  ;;  %844 = vmatprep.subr.bf16.mxu0 %v929_v56 }
  0x32   :  { %866 = vmatprep.subr.bf16.mxu1 %v930_v57 }
  0x34   :  { %845 = vmatpush3.bf16.msra.mxu0 %v931_v58 }
  0x35   :  { %867 = vmatpush3.bf16.msra.mxu1 %v932_v59  ;;  %846 = vmatprep.subr.bf16.mxu0 %v933_v60 }
  0x36   :  { %868 = vmatprep.subr.bf16.mxu1 %v934_v61 }
  0x38   :  { %847 = vmatpush3.bf16.msra.mxu0 %v935_v62 }
  0x39   :  { %869 = vmatpush3.bf16.msra.mxu1 %v936_v63  ;;  %848 = vmatprep.subr.bf16.mxu0 %v937_v0 }
  0x3a   :  { %870 = vmatprep.subr.bf16.mxu1 %v938_v1 }
  0x3c   :  { %849 = vmatpush3.bf16.msra.mxu0 %v939_v2 }
  0x3d   :  { %871 = vmatpush3.bf16.msra.mxu1 %v940_v3  ;;  %850 = vmatprep.subr.bf16.mxu0 %v941_v4 }
  0x3e   :  { %872 = vmatprep.subr.bf16.mxu1 %v942_v5 }
  0x40   :  { %851 = vmatpush3.bf16.msra.mxu0 %v943_v6 }
  0x41   :  { %8 = vsyncpa [#allocation3], 0  ;;  %873 = vmatpush3.bf16.msra.mxu1 %v944_v7  ;;  %v28_v14 = vpack.c.bf16 %v20_v12, %v20_v12  ;;  %v30_v15 = vpack.c.bf16 %v22_v13, %v22_v13  ;;  %663 = vmatprep.mubr.bf16.mxu0 %v29_v10  ;;  %v727_v18 = vld [vmem:[%s1223_s2] ss:$0 sm:$0xff]  ;;  %s969_s0 = smov [#allocation2]   ;;  %vm711_vm0 = vcmask 80896  }
  0x42   :  { %703 = vmatprep.mubr.bf16.mxu1 %v31_v11  ;;  %s719_s2 = sshll.u32 %s969_s0, 4  ;;  %s720_s2 = int_to_ptr.vmem [resolvable:$true] %s719_s2 }
  0x43   :  { %664 = vmatmul.mubr.bf16.vlgmr.msra.gmra.mrb[4].mxu0 %v28_v14  ;;  %s945_s22 = scalar_lea.vmem %s720_s2, 128  ;;  %p950_p1 = scmp.lt.s32.totalorder %s720_s2, %s720_s2 }
  0x44   :  { %704 = vmatmul.mubr.bf16.vlgmr.msra.gmra.mrb[4].mxu1 %v30_v15  ;;  %p946_p0 = scmp.ne.s32.totalorder %s720_s2, %s945_s22  ;;  %p951_p2 = scmp.lt.s32.totalorder %s945_s22, %s945_s22 }
  0x46   :  { %p952_p3 = por %p951_p2, %p950_p1 }
  0x48   :  { %p953_p4 = pnand %p952_p3, %p946_p0 }
  0xf6   :  { %v808_v16 = vpop.f32.mrb[0].mxu0 }
  0xf7   :  { %v830_v17 = vpop.f32.mrb[0].mxu1  ;;  %v809_v19 = vpop.f32.mrb[1].mxu0 }
  0xf8   :  { %v831_v20 = vpop.f32.mrb[1].mxu1  ;;  %v810_v21 = vadd.f32 %v809_v19, %v808_v16  ;;  %v811_v23 = vpop.f32.mrb[2].mxu0 }
  0xf9   :  { %v832_v22 = vadd.f32 %v831_v20, %v830_v17  ;;  %v833_v24 = vpop.f32.mrb[2].mxu1  ;;  %v812_v25 = vpop.f32.mrb[3].mxu0 }
  0xfa   :  { %v834_v26 = vpop.f32.mrb[3].mxu1  ;;  %v586_v27 = vadd.f32 %v810_v21, %v727_v18 }
  0xfc   :  { %v626_v28 = vadd.f32 %v832_v22, %v586_v27 }
 0x116   :  { %v852_v29 = vpop.f32.mrb[4].mxu0 }
 0x117   :  { %v874_v30 = vpop.f32.mrb[4].mxu1  ;;  %v853_v31 = vpop.f32.mrb[5].mxu0 }
 0x118   :  { %v854_v32 = vadd.f32 %v853_v31, %v852_v29  ;;  %v875_v33 = vpop.f32.mrb[5].mxu1  ;;  %v855_v34 = vpop.f32.mrb[6].mxu0 }
 0x119   :  { %v876_v35 = vadd.f32 %v875_v33, %v874_v30  ;;  %v877_v36 = vpop.f32.mrb[6].mxu1  ;;  %v856_v37 = vpop.f32.mrb[7].mxu0 }
 0x11a   :  { %v666_v38 = vadd.f32 %v854_v32, %v626_v28  ;;  %v878_v39 = vpop.f32.mrb[7].mxu1 }
 0x11c   :  { %v706_v40 = vadd.f32 %v876_v35, %v666_v38 }
 0x11e   :  { %712 = vst.msk [vmem:[#allocation2] sm:$0xff] %vm711_vm0, %v706_v40 }
 0x11f   :  { %956 = shalt.err (!%p953_p4)
}
 0x120   :  { %s957_s25 = scalar_lea.hbm %s1224_s3, 128 }
 0x121   :  { %p958_p5 = scmp.ne.s32.totalorder %s1224_s3, %s957_s25  ;;  %p961_p6 = scmp.lt.u32.totalorder %s957_s25, %s1224_s3 }
 0x123   :  { %p963_p7 = pnand %p961_p6, %p958_p5 }
 0x125   :  { %966 = shalt.err (!%p963_p7)
}
 0x126   :  { %722 = dma.vmem_to_hbm [thread:$0]  %s720_s2, 128, %s1224_s3, [#allocation3]  }
 0x127   :  { %967 = dma.done.wait [#allocation3], 128  }
 0x128   :  { %968 = vsyncadd [#allocation3], 4294967168 }
 0x129   :  { %726 = vsyncpa [#allocation3], 1 }

</bundles_post_ra>
